<compile_context>
chip_gen: v7x
topology: tpu7x:2x2x1
jax: 0.10.0
libtpu: 0.0.40
codegen_flags: <defaults>
</compile_context>

<pallas_src>
import functools

import jax
import jax.numpy as jnp
from jax.experimental import pallas as pl
from jax.experimental.pallas import tpu as pltpu


def mlp_kernel(xT_ref, w1_ref, b1_ref, w2_ref, b2_ref, w3_ref, b3_ref, o_ref):
    # xT_ref: (D, TB) bf16  |  w1: (32, D) bf16, b1: (32, 1) f32
    # w2: (16, 32) bf16, b2: (16, 1) f32 | w3: (16, 1) bf16, b3: (1, 1) f32
    xT = xT_ref[...]

    # fc1 + ReLU: (32, D) @ (D, TB) -> (32, TB), accumulate in f32.
    h1 = jnp.dot(w1_ref[...], xT, preferred_element_type=jnp.float32)
    h1 = jnp.maximum(h1 + b1_ref[...], 0.0)

    # fc2 + ReLU: (16, 32) @ (32, TB) -> (16, TB).
    h2 = jnp.dot(w2_ref[...], h1.astype(w2_ref.dtype),
                 preferred_element_type=jnp.float32)
    h2 = jnp.maximum(h2 + b2_ref[...], 0.0)

    # fc3 (single output unit): VPU multiply + sublane reduce instead of an
    # MXU matmul with one useful output column.
    out = jnp.sum(w3_ref[...].astype(jnp.float32) * h2, axis=0, keepdims=True)
    o_ref[...] = (out + b3_ref[...]).astype(o_ref.dtype)  # (1, TB), lane-dense


def _round_up(n, m):
    return pl.cdiv(n, m) * m


@functools.partial(jax.jit, static_argnames=("tb",))
def simple_nn_forward(x, params, *, tb=512):
    """x: (B, input_dim) float32.  Returns (B, 1) float32."""
    w1, b1, w2, b2, w3, b3 = (
        params["w1"], params["b1"], params["w2"],
        params["b2"], params["w3"], params["b3"],
    )
    B, D = x.shape

    # Batch tile: multiple of 128 lanes; don't exceed the (padded) batch.
    tb = min(tb, _round_up(B, 128))
    b_pad = _round_up(B, tb)
    grid = (b_pad // tb,)

    # Stream x in bf16, batch on the lane axis; zero-pad the ragged tail.
    xT = jnp.zeros((D, b_pad), jnp.bfloat16).at[:, :B].set(
        x.T.astype(jnp.bfloat16))

    # Weights/biases: full-array blocks, constant index_map -> VMEM-resident,
    # never re-DMA'd across grid steps.
    pinned = lambda a: pl.BlockSpec(a.shape, lambda i: (0,) * a.ndim)

    out = pl.pallas_call(
        mlp_kernel,
        out_shape=jax.ShapeDtypeStruct((1, b_pad), jnp.float32),
        grid=grid,
        in_specs=[
            pl.BlockSpec((D, tb), lambda i: (0, i)),   # x tile, pipelined
            pinned(w1), pinned(b1),
            pinned(w2), pinned(b2),
            pinned(w3), pinned(b3),
        ],
        out_specs=pl.BlockSpec((1, tb), lambda i: (0, i)),
        compiler_params=pltpu.CompilerParams(
            dimension_semantics=("parallel",),       # 2x on v7x's two TCs
            vmem_limit_bytes=32 * 1024 * 1024,       # safe on v5e/v6e/v7x
        ),
    )(xT, w1, b1, w2, b2, w3, b3)

    return out[:, :B].T  # back to (B, 1)


def init_params(key, input_dim):
    """Init mimicking nn.Linear's U(-1/sqrt(fan_in), 1/sqrt(fan_in)).

    Weights are kept in PyTorch (out, in) orientation (bf16 for streaming);
    w3 is stored as a (16, 1) column for the VPU mul+reduce fc3.  Biases are
    (out, 1) f32 columns so they broadcast across the lane (batch) axis.
    """
    dims = [(input_dim, 32), (32, 16), (16, 1)]
    params = {}
    for i, (fan_in, fan_out) in enumerate(dims, start=1):
        key, kw, kb = jax.random.split(key, 3)
        bound = 1.0 / (fan_in ** 0.5)
        w = jax.random.uniform(kw, (fan_out, fan_in), jnp.float32, -bound, bound)
        b = jax.random.uniform(kb, (fan_out, 1), jnp.float32, -bound, bound)
        if i == 3:
            w = w.T  # (16, 1) column
        params[f"w{i}"] = w.astype(jnp.bfloat16)
        params[f"b{i}"] = b
    return params


def reference_forward(x, params):
    """Pure-JAX reference mirroring the kernel's math/dtypes."""
    xT = x.T.astype(jnp.bfloat16)
    h1 = jnp.maximum(
        jnp.dot(params["w1"], xT, preferred_element_type=jnp.float32)
        + params["b1"], 0.0)
    h2 = jnp.maximum(
        jnp.dot(params["w2"], h1.astype(jnp.bfloat16),
                preferred_element_type=jnp.float32)
        + params["b2"], 0.0)
    out = jnp.sum(params["w3"].astype(jnp.float32) * h2, axis=0, keepdims=True)
    return (out + params["b3"]).T


if __name__ == "__main__":
    key = jax.random.PRNGKey(0)
    batch, input_dim = 8, 16

    key, kx = jax.random.split(key)
    x = jax.random.normal(kx, (batch, input_dim), jnp.float32)
    params = init_params(key, input_dim)

    out = jax.block_until_ready(simple_nn_forward(x, params))
    ref = reference_forward(x, params)
    assert out.shape == (batch, 1), out.shape
    assert jnp.allclose(out, ref, atol=1e-4, rtol=1e-4), "mismatch vs reference"

    # Ragged / multi-tile batch: exercises the grid + padded last tile.
    key, kx2 = jax.random.split(key)
    x2 = jax.random.normal(kx2, (1000, input_dim), jnp.float32)
    out2 = jax.block_until_ready(simple_nn_forward(x2, params))
    ref2 = reference_forward(x2, params)
    assert out2.shape == (1000, 1), out2.shape
    assert jnp.allclose(out2, ref2, atol=1e-4, rtol=1e-4), "mismatch (ragged)"

    print("KERNEL_OK")
</pallas_src>

<mosaic_0001>
module attributes {stable_mosaic.version = 11 : i64} {
  func.func @mlp_kernel(%arg0: i32, %arg1: memref<16x128xbf16, #tpu.memory_space<vmem>>, %arg2: memref<32x16xbf16, #tpu.memory_space<vmem>>, %arg3: memref<32x1xf32, #tpu.memory_space<vmem>>, %arg4: memref<16x32xbf16, #tpu.memory_space<vmem>>, %arg5: memref<16x1xf32, #tpu.memory_space<vmem>>, %arg6: memref<16x1xbf16, #tpu.memory_space<vmem>>, %arg7: memref<1x1xf32, #tpu.memory_space<vmem>>, %arg8: memref<1x128xf32, #tpu.memory_space<vmem>>) attributes {dimension_semantics = [#tpu.dimension_semantics<parallel>], iteration_bounds = array<i64: 1>, scalar_prefetch = 0 : i64, scratch_operands = 0 : i64, tpu.core_type = #tpu.core_type<tc>, window_params = [{transform_indices = @transform_0, window_bounds = array<i64: 16, 128>}, {pipeline_mode = #tpu.pipeline_mode<synchronous>, transform_indices = @transform_1, window_bounds = array<i64: 32, 16>}, {pipeline_mode = #tpu.pipeline_mode<synchronous>, transform_indices = @transform_2, window_bounds = array<i64: 32, 1>}, {pipeline_mode = #tpu.pipeline_mode<synchronous>, transform_indices = @transform_3, window_bounds = array<i64: 16, 32>}, {pipeline_mode = #tpu.pipeline_mode<synchronous>, transform_indices = @transform_4, window_bounds = array<i64: 16, 1>}, {pipeline_mode = #tpu.pipeline_mode<synchronous>, transform_indices = @transform_5, window_bounds = array<i64: 16, 1>}, {pipeline_mode = #tpu.pipeline_mode<synchronous>, transform_indices = @transform_6, window_bounds = array<i64: 1, 1>}, {transform_indices = @transform_7, window_bounds = array<i64: 1, 128>}]} {
    %c0 = arith.constant 0 : index
    %c0_0 = arith.constant 0 : index
    %0 = vector.load %arg1[%c0, %c0_0] : memref<16x128xbf16, #tpu.memory_space<vmem>>, vector<16x128xbf16>
    %c0_1 = arith.constant 0 : index
    %c0_2 = arith.constant 0 : index
    %1 = vector.load %arg2[%c0_1, %c0_2] : memref<32x16xbf16, #tpu.memory_space<vmem>>, vector<32x16xbf16>
    %cst = arith.constant dense<0.000000e+00> : vector<32x128xf32>
    %2 = tpu.matmul %1, %0, %cst {dimension_numbers = #tpu.dot_dimension_numbers<[1], [0], [0], [1], [0, 0, 1, 1], [], []>} : vector<32x16xbf16>, vector<16x128xbf16>, vector<32x128xf32> -> vector<32x128xf32>
    %c0_3 = arith.constant 0 : index
    %c0_4 = arith.constant 0 : index
    %3 = vector.load %arg3[%c0_3, %c0_4] : memref<32x1xf32, #tpu.memory_space<vmem>>, vector<32x1xf32>
    %4 = vector.broadcast %3 : vector<32x1xf32> to vector<32x128xf32>
    %5 = arith.addf %2, %4 : vector<32x128xf32>
    %cst_5 = arith.constant 0.000000e+00 : f32
    %6 = vector.broadcast %cst_5 : f32 to vector<32x128xf32>
    %7 = arith.maximumf %5, %6 : vector<32x128xf32>
    %c0_6 = arith.constant 0 : index
    %c0_7 = arith.constant 0 : index
    %8 = vector.load %arg4[%c0_6, %c0_7] : memref<16x32xbf16, #tpu.memory_space<vmem>>, vector<16x32xbf16>
    %9 = arith.truncf %7 : vector<32x128xf32> to vector<32x128xbf16>
    %cst_8 = arith.constant dense<0.000000e+00> : vector<16x128xf32>
    %10 = tpu.matmul %8, %9, %cst_8 {dimension_numbers = #tpu.dot_dimension_numbers<[1], [0], [0], [1], [0, 0, 1, 1], [], []>} : vector<16x32xbf16>, vector<32x128xbf16>, vector<16x128xf32> -> vector<16x128xf32>
    %c0_9 = arith.constant 0 : index
    %c0_10 = arith.constant 0 : index
    %11 = vector.load %arg5[%c0_9, %c0_10] : memref<16x1xf32, #tpu.memory_space<vmem>>, vector<16x1xf32>
    %12 = vector.broadcast %11 : vector<16x1xf32> to vector<16x128xf32>
    %13 = arith.addf %10, %12 : vector<16x128xf32>
    %cst_11 = arith.constant 0.000000e+00 : f32
    %14 = vector.broadcast %cst_11 : f32 to vector<16x128xf32>
    %15 = arith.maximumf %13, %14 : vector<16x128xf32>
    %c0_12 = arith.constant 0 : index
    %c0_13 = arith.constant 0 : index
    %16 = vector.load %arg6[%c0_12, %c0_13] : memref<16x1xbf16, #tpu.memory_space<vmem>>, vector<16x1xbf16>
    %17 = arith.extf %16 : vector<16x1xbf16> to vector<16x1xf32>
    %18 = vector.broadcast %17 : vector<16x1xf32> to vector<16x128xf32>
    %19 = arith.mulf %18, %15 : vector<16x128xf32>
    %cst_14 = arith.constant dense<0.000000e+00> : vector<128xf32>
    %20 = vector.multi_reduction <add>, %19, %cst_14 [0] : vector<16x128xf32> to vector<128xf32>
    %21 = vector.shape_cast %20 : vector<128xf32> to vector<1x128xf32>
    %c0_15 = arith.constant 0 : index
    %c0_16 = arith.constant 0 : index
    %22 = vector.load %arg7[%c0_15, %c0_16] : memref<1x1xf32, #tpu.memory_space<vmem>>, vector<1x1xf32>
    %23 = vector.broadcast %22 : vector<1x1xf32> to vector<1x128xf32>
    %24 = arith.addf %21, %23 : vector<1x128xf32>
    %c0_17 = arith.constant 0 : index
    %c0_18 = arith.constant 0 : index
    %25 = vector.load %arg8[%c0_17, %c0_18] : memref<1x128xf32, #tpu.memory_space<vmem>>, vector<1x128xf32>
    tpu.vector_store %arg8[%c0_17, %c0_18], %24 {strides = array<i32>} : memref<1x128xf32, #tpu.memory_space<vmem>>, vector<1x128xf32>,
    return
  }
  func.func @transform_0(%arg0: i32) -> (i32, i32) {
    %c0_i32 = arith.constant 0 : i32
    %c0_i32_0 = arith.constant 0 : i32
    return %c0_i32, %arg0 : i32, i32
  }
  func.func @transform_1(%arg0: i32) -> (i32, i32) {
    %c0_i32 = arith.constant 0 : i32
    %c0_i32_0 = arith.constant 0 : i32
    %c0_i32_1 = arith.constant 0 : i32
    return %c0_i32, %c0_i32_0 : i32, i32
  }
  func.func @transform_2(%arg0: i32) -> (i32, i32) {
    %c0_i32 = arith.constant 0 : i32
    %c0_i32_0 = arith.constant 0 : i32
    %c0_i32_1 = arith.constant 0 : i32
    return %c0_i32, %c0_i32_0 : i32, i32
  }
  func.func @transform_3(%arg0: i32) -> (i32, i32) {
    %c0_i32 = arith.constant 0 : i32
    %c0_i32_0 = arith.constant 0 : i32
    %c0_i32_1 = arith.constant 0 : i32
    return %c0_i32, %c0_i32_0 : i32, i32
  }
  func.func @transform_4(%arg0: i32) -> (i32, i32) {
    %c0_i32 = arith.constant 0 : i32
    %c0_i32_0 = arith.constant 0 : i32
    %c0_i32_1 = arith.constant 0 : i32
    return %c0_i32, %c0_i32_0 : i32, i32
  }
  func.func @transform_5(%arg0: i32) -> (i32, i32) {
    %c0_i32 = arith.constant 0 : i32
    %c0_i32_0 = arith.constant 0 : i32
    %c0_i32_1 = arith.constant 0 : i32
    return %c0_i32, %c0_i32_0 : i32, i32
  }
  func.func @transform_6(%arg0: i32) -> (i32, i32) {
    %c0_i32 = arith.constant 0 : i32
    %c0_i32_0 = arith.constant 0 : i32
    %c0_i32_1 = arith.constant 0 : i32
    return %c0_i32, %c0_i32_0 : i32, i32
  }
  func.func @transform_7(%arg0: i32) -> (i32, i32) {
    %c0_i32 = arith.constant 0 : i32
    %c0_i32_0 = arith.constant 0 : i32
    return %c0_i32, %arg0 : i32, i32
  }
}

</mosaic_0001>

<bundles_post_ra>
// kernel: simple_nn_forward.1
= control target key start
LH: loop header
LB: loop body
LE: loop exit
PB: predicated region body
PF: predicated region fallthrough
CT: control target
= control target key end

     0   :  { %vm75_vm0 = vcmask 130048   ;;  %v287_v1 = vmov 0   ;;  %v288_v16 = vmov 0.0   ;;  %vm289_vm1 = vmmov 0   ;;  %s371_s0 = inlined_call_operand.vmem [shape: bf16[16,128], index: 0, kind: input, shape index: {}]   ;;  %s372_s1 = inlined_call_operand.vmem [shape: bf16[32,16], index: 1, kind: input, shape index: {}]   ;;  %s373_s6 = inlined_call_operand.<no memory space> [shape: f32[1,1], index: 6, kind: input, shape index: {}]   ;;  %s374_s2 = inlined_call_operand.vmem [shape: f32[32,1], index: 2, kind: input, shape index: {}]   ;;  %s375_s5 = inlined_call_operand.vmem [shape: bf16[16,1], index: 5, kind: input, shape index: {}]   ;;  %s376_s4 = inlined_call_operand.vmem [shape: f32[16,1], index: 4, kind: input, shape index: {}]   ;;  %s377_s3 = inlined_call_operand.vmem [shape: bf16[16,32], index: 3, kind: input, shape index: {}]   ;;  %s378_s7 = inlined_call_operand.vmem [shape: f32[1,128], index: 7, kind: output, shape index: {}]  }
   0x1   :  { %v283_v0 = vld [vmem:[%s371_s0] sm:$0xff]   ;;  %276 = vset.pattern.permute.xlu0 %v287_v1  ;;  %277 = vset.pattern.permute.xlu1 %v287_v1  ;;  %v12_v2 = vstv %s373_s6  ;;  %v285_v4 = vld [vmem:[%s372_s1 + $0x8] sm:$0xff]   ;;  %v37_v6 = vld [vmem:[%s374_s2 + $0x10] sm:$0xff]  ;;  %vm156_vm2 = vcmask 261120   ;;  %v232_v51 = vlaneseq }
   0x2   :  { %v284_v3 = vld [vmem:[%s372_s1] sm:$0xff]   ;;  %13 = vst [vmem:[#allocation2] sm:$0x1] %v12_v2  ;;  %259 = vmatprep.subr.bf16.mxu0 %v283_v0  ;;  %51 = vperm.xlu1 %277, %v37_v6   ;;  %v36_v7 = vld [vmem:[%s374_s2 + $0x8] sm:$0xff]  ;;  %v38_v8 = vld [vmem:[%s374_s2 + $0x18] sm:$0xff] }
   0x3   :  { %260 = vmatpush3.bf16.msra.mxu0 %v283_v0  ;;  %261 = vmatprep.mubr.msk.bf16.mxu0 %vm75_vm0, %v284_v3  ;;  %v35_v5 = vld [vmem:[%s374_s2] sm:$0xff]  ;;  %v140_v13 = vld [vmem:[%s376_s4 + $0x8] sm:$0xff]  ;;  %v233_v54 = vshrl.u32 %v232_v51, 7 }
   0x4   :  { %41 = vperm.xlu0 %276, %v35_v5   ;;  %v250_v9 = vld [vmem:[%s375_s5] sm:$0xff]   ;;  %265 = vmatprep.subr.bf16.mxu1 %v288_v16 }
   0x5   :  { %v251_v10 = vunpack.c.l.bf16 %v250_v9  ;;  %v252_v11 = vunpack.c.h.bf16 %v250_v9  ;;  %v139_v12 = vld [vmem:[%s376_s4] sm:$0xff]  ;;  %269 = vmatprep.mubr.msk.bf16.mxu1 %vm289_vm1, %v288_v16  ;;  %v234_v57 = vsub.s32 0, %v233_v54 }
   0x6   :  { %262 = vmatmul.mubr.msk.bf16.vlgmr.msra.gmra.mrb[0].mxu0 %vm75_vm0, %v285_v4  ;;  %56 = vperm.xlu1 %277, %v38_v8   ;;  %v286_v35 = vld [vmem:[%s377_s3] sm:$0xff]  }
   0x7   :  { %v278_v14 = vpack.i.bf16 %v252_v11, %v251_v10 }
   0x8   :  { %46 = vperm.xlu0 %276, %v36_v7  }
   0x9   :  { %v226_v15 = vld [vmem:[#allocation2] sm:$0x1] }
   0xa   :  { %148 = vperm.xlu1 %277, %v140_v13  }
   0xc   :  { %143 = vperm.xlu0 %276, %v139_v12  }
   0xe   :  { %229 = vperm.xlu1 %277, %v226_v15  }
  0x10   :  { %279 = vperm.xlu0 %276, %v278_v14  }
  0x81   :  { %v52_v17 = vpop.permute.xlu1 %51 }
  0x83   :  { %v42_v18 = vpop.permute.xlu0 %41 }
  0x85   :  { %v57_v22 = vpop.permute.xlu1 %56 }
  0x87   :  { %v47_v25 = vpop.permute.xlu0 %46 }
  0x89   :  { %v149_v38 = vpop.permute.xlu1 %148 }
  0x8b   :  { %v144_v36 = vpop.permute.xlu0 %143 }
  0x8d   :  { %v230_v59 = vpop.permute.xlu1 %229 }
  0x8e   :  { %v235_v61 = vrot.slane %v230_v59, %v234_v57 }
  0x8f   :  { %v280_v41 = vpop.permute.xlu0 %279 }
  0x90   :  { %v282_v46 = vunpack.i.h.bf16 %v280_v41  ;;  %v281_v47 = vunpack.i.l.bf16 %v280_v41 }
  0xd9   :  { %v263_v19 = vpop.f32.mrb[0].mxu0 }
  0xda   :  { %v125_v20 = vadd.f32 %v263_v19, %v52_v17  ;;  %v116_v21 = vpop.f32.mrb[1].mxu0 }
  0xdb   :  { %v117_v23 = vadd.f32 %v116_v21, %v42_v18  ;;  %v264_v24 = vpop.f32.mrb[2].mxu0 }
  0xdc   :  { %v128_v26 = vadd.f32 %v264_v24, %v57_v22  ;;  %v119_v27 = vpop.f32.mrb[3].mxu0  ;;  %v133_v29 = vmax.f32 %v125_v20, 0.0 }
  0xdd   :  { %v120_v28 = vadd.f32 %v119_v27, %v47_v25  ;;  %v131_v31 = vmax.f32 %v117_v23, 0.0 }
  0xde   :  { %v134_v30 = vmax.f32 %v128_v26, 0.0 }
  0xdf   :  { %v132_v32 = vmax.f32 %v120_v28, 0.0 }
  0xe0   :  { %v138_v33 = vpack.c.bf16 %v134_v30, %v133_v29 }
  0xe1   :  { %v137_v34 = vpack.c.bf16 %v132_v32, %v131_v31 }
  0xe3   :  { %266 = vmatpush3.bf16.msra.mxu1 %v137_v34 }
  0xe4   :  { %267 = vmatprep.subr.bf16.mxu1 %v288_v16 }
  0xe7   :  { %268 = vmatpush3.bf16.msra.mxu1 %v138_v33 }
  0xea   :  { %270 = vmatmul.mubr.msk.bf16.vlgmr.msra.gmra.mrb[0].mxu1 %vm156_vm2, %v286_v35 }
 0x1bd   :  { %v194_v37 = vpop.f32.mrb[0].mxu1 }
 0x1be   :  { %v195_v39 = vadd.f32 %v194_v37, %v144_v36  ;;  %v271_v40 = vpop.f32.mrb[1].mxu1 }
 0x1bf   :  { %v197_v42 = vpop.f32.mrb[2].mxu1 }
 0x1c0   :  { %v201_v43 = vmax.f32 %v195_v39, 0.0  ;;  %v198_v44 = vadd.f32 %v197_v42, %v149_v38  ;;  %v272_v45 = vpop.f32.mrb[3].mxu1 }
 0x1c2   :  { %v202_v48 = vmax.f32 %v198_v44, 0.0  ;;  %v217_v49 = vmul.f32 %v281_v47, %v201_v43 }
 0x1c4   :  { %v218_v50 = vmul.f32 %v282_v46, %v202_v48 }
 0x1c6   :  { %v219_v52 = vadd.f32 %v218_v50, %v217_v49 }
 0x1c8   :  { %v220_v53 = vrot.slane %v219_v52, 4 }
 0x1ca   :  { %v221_v55 = vadd.f32 %v220_v53, %v219_v52 }
 0x1cc   :  { %v222_v56 = vrot.slane %v221_v55, 2 }
 0x1ce   :  { %v223_v58 = vadd.f32 %v222_v56, %v221_v55 }
 0x1d0   :  { %v224_v60 = vrot.slane %v223_v58, 1 }
 0x1d2   :  { %v225_v62 = vadd.f32 %v224_v60, %v223_v58 }
 0x1d4   :  { %v236_v63 = vadd.f32 %v235_v61, %v225_v62 }
 0x1d6   :  { %237 = vst [vmem:[%s378_s7] sm:$0x1] %v236_v63 }

</bundles_post_ra>
